<compile_context>
chip_gen: v5e
topology: v5e:2x2
jax: 0.10.0
libtpu: 0.0.40
codegen_flags: <defaults>
</compile_context>

<pallas_src>
import functools

import jax
import jax.numpy as jnp
from jax.experimental import pallas as pl
from jax.experimental.pallas import tpu as pltpu


def _round_up(n: int, m: int) -> int:
    return ((n + m - 1) // m) * m


def _pick_tk(D: int, tk_max: int) -> int:
    """Largest multiple-of-128 K tile <= tk_max, preferring one that divides D
    exactly (so x needs no padding copy along D)."""
    d128 = _round_up(D, 128)
    tk = min(_round_up(tk_max, 128), d128)
    if D % 128 == 0:
        t = min(tk, D)
        while t >= 128 and D % t != 0:
            t -= 128
        if t >= 128:
            return t
    return tk


def vib_kernel(x_ref, we_ref, be_ref, wa_ref, ba_ref, eps_ref,
               logits_ref, feats_ref, *, z_dim, tk, w_enc_resident):
    """Grid = (batch_tiles [parallel], k_tiles [arbitrary, reduction])."""
    k = pl.program_id(1)

    if w_enc_resident:
        # W_enc lives fully in VMEM; slice the K chunk for this step.
        start = pl.multiple_of(k * tk, tk)
        w_tile = we_ref[pl.ds(start, tk), :]
    else:
        w_tile = we_ref[...]

    # Streamed encoder matmul, f32 accumulation directly in the (VMEM-resident)
    # feats output block -- its out BlockSpec index (i, 0) is constant over k.
    part = jnp.dot(x_ref[...], w_tile, preferred_element_type=jnp.float32)

    @pl.when(k == 0)
    def _():
        feats_ref[...] = part

    @pl.when(k != 0)
    def _():
        feats_ref[...] += part

    @pl.when(k == pl.num_programs(1) - 1)
    def _():
        feats = feats_ref[...] + be_ref[...]                # (TB, two_z_pad) f32
        feats_ref[...] = feats                              # fused mu|logvar store
        mu = feats[:, :z_dim]
        logvar = feats[:, z_dim:2 * z_dim]
        z = mu + eps_ref[...] * jnp.exp(0.5 * logvar)       # reparameterize
        logits = jnp.dot(z, wa_ref[...],
                         preferred_element_type=jnp.float32) + ba_ref[...]
        logits_ref[...] = logits.astype(logits_ref.dtype)   # lane-dense (128-pad)


@functools.partial(jax.jit, static_argnames=("tb", "tk", "use_bf16"))
def vib_forward(x_nchw, w_enc, b_enc, w_app, b_app, eps,
                *, tb=256, tk=2048, use_bf16=True):
    """VIB forward. Returns (logits_y, mu, logvar) — same semantics as the module.

    NOTE: with use_bf16=True (default) x and W_enc are fed to the MXU in bf16
    with f32 accumulation; pass x already cast to bf16 by its producer to avoid
    an extra HBM round-trip here.
    """
    B = x_nchw.shape[0]
    D = 1
    for d in x_nchw.shape[1:]:
        D *= d

    in_dtype = jnp.bfloat16 if use_bf16 else jnp.float32
    x_flat = x_nchw.reshape(B, D)

    two_z = w_enc.shape[1]
    z_dim = two_z // 2
    n_cls = w_app.shape[1]

    # --- tiling ---------------------------------------------------------------
    sub = 16 if use_bf16 else 8                       # bf16 packs 16 sublanes/vreg
    B_align = _round_up(B, sub)
    TB = min(_round_up(tb, sub), B_align)
    # Prefer >= 2 batch tiles when batch is big enough (v7x megacore sharding).
    if B_align // TB < 2 and TB >= 2 * sub and (TB // 2) % sub == 0:
        TB = TB // 2
    B_pad = _round_up(B, TB)

    TK = _pick_tk(D, tk)
    D_pad = _round_up(D, TK)

    two_z_pad = _round_up(max(two_z, 128), 128)       # full-lane accumulator/store
    n_cls_pad = _round_up(max(n_cls, 128), 128)       # 128-lane logits / MXU tile

    # --- inputs: cast/pad only when actually needed -----------------------------
    if x_flat.dtype != in_dtype:
        x_flat = x_flat.astype(in_dtype)              # ideally already done upstream
    if (B_pad, D_pad) != (B, D):
        x_flat = jnp.pad(x_flat, ((0, B_pad - B), (0, D_pad - D)))

    we_p = jnp.pad(w_enc.astype(jnp.float32),
                   ((0, D_pad - D), (0, two_z_pad - two_z))).astype(in_dtype)
    be_p = jnp.pad(b_enc.reshape(1, two_z).astype(jnp.float32),
                   ((0, 0), (0, two_z_pad - two_z)))
    wa_p = jnp.pad(w_app.astype(jnp.float32), ((0, 0), (0, n_cls_pad - n_cls)))
    ba_p = jnp.pad(b_app.reshape(1, n_cls).astype(jnp.float32),
                   ((0, 0), (0, n_cls_pad - n_cls)))
    eps_p = eps.astype(jnp.float32)
    if B_pad != B:
        eps_p = jnp.pad(eps_p, ((0, B_pad - B), (0, 0)))

    dt_bytes = 2 if use_bf16 else 4
    n_btiles = B_pad // TB
    n_ktiles = D_pad // TK

    # Keep W_enc VMEM-resident (DMA'd once) when it fits comfortably; otherwise
    # stream (TK, two_z_pad) tiles over k. (If n_ktiles == 1 both are identical.)
    w_enc_resident = (n_ktiles > 1) and (D_pad * two_z_pad * dt_bytes <= 8 * 1024 * 1024)
    if w_enc_resident:
        we_spec = pl.BlockSpec((D_pad, two_z_pad), lambda i, k: (0, 0))
    else:
        we_spec = pl.BlockSpec((TK, two_z_pad), lambda i, k: (k, 0))

    # --- advisory cost estimate -------------------------------------------------
    flops = 2 * B_pad * D_pad * two_z_pad + 2 * B_pad * z_dim * n_cls_pad
    bytes_accessed = (
        B_pad * D_pad * dt_bytes
        + (1 if w_enc_resident else n_btiles) * D_pad * two_z_pad * dt_bytes
        + B_pad * z_dim * 4
        + B_pad * (n_cls_pad + two_z_pad) * 4
        + (z_dim * n_cls_pad + two_z_pad + n_cls_pad) * 4
    )
    cost = pl.CostEstimate(flops=flops, transcendentals=B_pad * z_dim,
                           bytes_accessed=bytes_accessed)

    # --- VMEM budget: double-buffered tiles + resident weights, clamped so it is
    #     safe on v7x (64 MiB/TC) while generous on v5e/v6e (128 MiB). -----------
    vmem_need = (
        2 * TB * TK * dt_bytes                                          # x
        + (2 * D_pad * two_z_pad * dt_bytes if w_enc_resident
           else 2 * TK * two_z_pad * dt_bytes)                          # W_enc
        + 2 * TB * z_dim * 4                                            # eps
        + 2 * TB * (n_cls_pad + two_z_pad) * 4                          # outputs
        + 2 * (z_dim * n_cls_pad + two_z_pad + n_cls_pad) * 4           # params
    )
    vmem_limit = int(min(max(2 * vmem_need, 32 * 1024 * 1024), 48 * 1024 * 1024))

    kernel = functools.partial(vib_kernel, z_dim=z_dim, tk=TK,
                               w_enc_resident=w_enc_resident)

    logits_pad, feats_pad = pl.pallas_call(
        kernel,
        out_shape=(
            jax.ShapeDtypeStruct((B_pad, n_cls_pad), jnp.float32),   # padded logits
            jax.ShapeDtypeStruct((B_pad, two_z_pad), jnp.float32),   # fused mu|logvar
        ),
        grid_spec=pltpu.PrefetchScalarGridSpec(
            num_scalar_prefetch=0,
            grid=(n_btiles, n_ktiles),
            in_specs=[
                pl.BlockSpec((TB, TK), lambda i, k: (i, k)),          # x tile
                we_spec,                                              # W_enc
                pl.BlockSpec((1, two_z_pad), lambda i, k: (0, 0)),    # b_enc
                pl.BlockSpec((z_dim, n_cls_pad), lambda i, k: (0, 0)),# W_app
                pl.BlockSpec((1, n_cls_pad), lambda i, k: (0, 0)),    # b_app
                pl.BlockSpec((TB, z_dim), lambda i, k: (i, 0)),       # eps tile
            ],
            out_specs=[
                pl.BlockSpec((TB, n_cls_pad), lambda i, k: (i, 0)),
                pl.BlockSpec((TB, two_z_pad), lambda i, k: (i, 0)),
            ],
        ),
        compiler_params=pltpu.CompilerParams(
            dimension_semantics=("parallel", "arbitrary"),
            vmem_limit_bytes=vmem_limit,
        ),
        cost_estimate=cost,
    )(x_flat, we_p, be_p, wa_p, ba_p, eps_p)

    logits_y = logits_pad[:B, :n_cls]
    mu = feats_pad[:B, :z_dim]
    logvar = feats_pad[:B, z_dim:two_z]
    return logits_y, mu, logvar


if __name__ == "__main__":
    # Small shapes consistent with the module's forward:
    #   x: [B=2, C=4, H=16, W=16] (NCHW), z_dim=32, num_classes=8.
    B, C, H, W = 2, 4, 16, 16
    D = C * H * W
    Z_DIM = 32
    N_CLS = 8

    key = jax.random.PRNGKey(0)
    k_x, k_we, k_be, k_wa, k_ba, k_eps = jax.random.split(key, 6)

    x_f32 = jax.random.normal(k_x, (B, C, H, W), dtype=jnp.float32)
    # Producer-side cast: the dominant streamed operand enters the kernel in bf16.
    x = x_f32.astype(jnp.bfloat16)

    # Deterministic synthetic parameters (encoder: D -> 2*z_dim, approx: z_dim -> n_cls)
    w_enc = jax.random.normal(k_we, (D, 2 * Z_DIM), dtype=jnp.float32) * (1.0 / jnp.sqrt(D))
    b_enc = jax.random.normal(k_be, (1, 2 * Z_DIM), dtype=jnp.float32) * 0.01
    w_app = jax.random.normal(k_wa, (Z_DIM, N_CLS), dtype=jnp.float32) * (1.0 / jnp.sqrt(Z_DIM))
    b_app = jax.random.normal(k_ba, (1, N_CLS), dtype=jnp.float32) * 0.01

    # eps ~ N(0,1), same role as torch.randn_like(std) in the module
    # TODO(synk): eps is sampled outside the kernel and passed in (no in-kernel RNG).
    eps = jax.random.normal(k_eps, (B, Z_DIM), dtype=jnp.float32)

    logits_y, mu, logvar = vib_forward(x, w_enc, b_enc, w_app, b_app, eps)
    jax.block_until_ready((logits_y, mu, logvar))

    # Reference in plain JAX: same math, same bf16 quantization of the encoder
    # operands (so the encoder path matches the kernel's bf16-in/f32-acc MXU).
    xb = x.astype(jnp.float32).reshape(B, D)
    wb = w_enc.astype(jnp.bfloat16).astype(jnp.float32)
    feats_ref = xb @ wb + b_enc
    mu_ref, logvar_ref = feats_ref[:, :Z_DIM], feats_ref[:, Z_DIM:]
    z_ref = mu_ref + eps * jnp.exp(0.5 * logvar_ref)
    logits_ref = z_ref @ w_app + b_app

    assert logits_y.shape == (B, N_CLS)
    assert mu.shape == (B, Z_DIM) and logvar.shape == (B, Z_DIM)
    assert jnp.allclose(mu, mu_ref, atol=2e-3, rtol=2e-3)
    assert jnp.allclose(logvar, logvar_ref, atol=2e-3, rtol=2e-3)
    assert jnp.allclose(logits_y, logits_ref, atol=2e-2, rtol=2e-2)

    print("KERNEL_OK")
</pallas_src>

<mosaic_0001>
module attributes {stable_mosaic.version = 11 : i64} {
  func.func @vib_kernel(%arg0: i32, %arg1: i32, %arg2: memref<16x1024xbf16, #tpu.memory_space<vmem>>, %arg3: memref<1024x128xbf16, #tpu.memory_space<vmem>>, %arg4: memref<1x128xf32, #tpu.memory_space<vmem>>, %arg5: memref<32x128xf32, #tpu.memory_space<vmem>>, %arg6: memref<1x128xf32, #tpu.memory_space<vmem>>, %arg7: memref<16x32xf32, #tpu.memory_space<vmem>>, %arg8: memref<16x128xf32, #tpu.memory_space<vmem>>, %arg9: memref<16x128xf32, #tpu.memory_space<vmem>>) attributes {dimension_semantics = [#tpu.dimension_semantics<parallel>, #tpu.dimension_semantics<arbitrary>], iteration_bounds = array<i64: 1, 1>, scalar_prefetch = 0 : i64, scratch_operands = 0 : i64, tpu.core_type = #tpu.core_type<tc>, window_params = [{transform_indices = @transform_0, window_bounds = array<i64: 16, 1024>}, {transform_indices = @transform_1, window_bounds = array<i64: 1024, 128>}, {pipeline_mode = #tpu.pipeline_mode<synchronous>, transform_indices = @transform_2, window_bounds = array<i64: 1, 128>}, {pipeline_mode = #tpu.pipeline_mode<synchronous>, transform_indices = @transform_3, window_bounds = array<i64: 32, 128>}, {pipeline_mode = #tpu.pipeline_mode<synchronous>, transform_indices = @transform_4, window_bounds = array<i64: 1, 128>}, {transform_indices = @transform_5, window_bounds = array<i64: 16, 32>}, {transform_indices = @transform_6, window_bounds = array<i64: 16, 128>}, {transform_indices = @transform_7, window_bounds = array<i64: 16, 128>}]} {
    %c0 = arith.constant 0 : index
    %c0_0 = arith.constant 0 : index
    %0 = vector.load %arg3[%c0, %c0_0] : memref<1024x128xbf16, #tpu.memory_space<vmem>>, vector<1024x128xbf16>
    %c0_1 = arith.constant 0 : index
    %c0_2 = arith.constant 0 : index
    %1 = vector.load %arg2[%c0_1, %c0_2] : memref<16x1024xbf16, #tpu.memory_space<vmem>>, vector<16x1024xbf16>
    %cst = arith.constant dense<0.000000e+00> : vector<16x128xf32>
    %2 = tpu.matmul %1, %0, %cst {dimension_numbers = #tpu.dot_dimension_numbers<[1], [0], [0], [1], [0, 0, 1, 1], [], []>} : vector<16x1024xbf16>, vector<1024x128xbf16>, vector<16x128xf32> -> vector<16x128xf32>
    %c0_i32 = arith.constant 0 : i32
    %3 = arith.cmpi eq, %arg1, %c0_i32 : i32
    %4 = arith.extui %3 : i1 to i32
    %c0_i32_3 = arith.constant 0 : i32
    %5 = arith.cmpi ne, %4, %c0_i32_3 : i32
    scf.if %5 {
      %c0_8 = arith.constant 0 : index
      %c0_9 = arith.constant 0 : index
      %12 = vector.load %arg9[%c0_8, %c0_9] : memref<16x128xf32, #tpu.memory_space<vmem>>, vector<16x128xf32>
      tpu.vector_store %arg9[%c0_8, %c0_9], %2 {strides = array<i32>} : memref<16x128xf32, #tpu.memory_space<vmem>>, vector<16x128xf32>,
    } else {
    }
    %c0_i32_4 = arith.constant 0 : i32
    %6 = arith.cmpi ne, %arg1, %c0_i32_4 : i32
    %7 = arith.extui %6 : i1 to i32
    %c0_i32_5 = arith.constant 0 : i32
    %8 = arith.cmpi ne, %7, %c0_i32_5 : i32
    scf.if %8 {
      %c0_8 = arith.constant 0 : index
      %c0_9 = arith.constant 0 : index
      %12 = vector.load %arg9[%c0_8, %c0_9] : memref<16x128xf32, #tpu.memory_space<vmem>>, vector<16x128xf32>
      %13 = arith.addf %12, %2 : vector<16x128xf32>
      %c0_10 = arith.constant 0 : index
      %c0_11 = arith.constant 0 : index
      %14 = vector.load %arg9[%c0_10, %c0_11] : memref<16x128xf32, #tpu.memory_space<vmem>>, vector<16x128xf32>
      tpu.vector_store %arg9[%c0_10, %c0_11], %13 {strides = array<i32>} : memref<16x128xf32, #tpu.memory_space<vmem>>, vector<16x128xf32>,
    } else {
    }
    %c0_i32_6 = arith.constant 0 : i32
    %9 = arith.cmpi eq, %arg1, %c0_i32_6 : i32
    %10 = arith.extui %9 : i1 to i32
    %c0_i32_7 = arith.constant 0 : i32
    %11 = arith.cmpi ne, %10, %c0_i32_7 : i32
    scf.if %11 {
      %c0_8 = arith.constant 0 : index
      %c0_9 = arith.constant 0 : index
      %12 = vector.load %arg9[%c0_8, %c0_9] : memref<16x128xf32, #tpu.memory_space<vmem>>, vector<16x128xf32>
      %c0_10 = arith.constant 0 : index
      %c0_11 = arith.constant 0 : index
      %13 = vector.load %arg4[%c0_10, %c0_11] : memref<1x128xf32, #tpu.memory_space<vmem>>, vector<1x128xf32>
      %14 = vector.broadcast %13 : vector<1x128xf32> to vector<16x128xf32>
      %15 = arith.addf %12, %14 : vector<16x128xf32>
      %c0_12 = arith.constant 0 : index
      %c0_13 = arith.constant 0 : index
      %16 = vector.load %arg9[%c0_12, %c0_13] : memref<16x128xf32, #tpu.memory_space<vmem>>, vector<16x128xf32>
      tpu.vector_store %arg9[%c0_12, %c0_13], %15 {strides = array<i32>} : memref<16x128xf32, #tpu.memory_space<vmem>>, vector<16x128xf32>,
      %17 = vector.extract_strided_slice %15 {offsets = [0, 0], sizes = [16, 32], strides = [1, 1]} : vector<16x128xf32> to vector<16x32xf32>
      %18 = vector.extract_strided_slice %15 {offsets = [0, 32], sizes = [16, 32], strides = [1, 1]} : vector<16x128xf32> to vector<16x32xf32>
      %c0_14 = arith.constant 0 : index
      %c0_15 = arith.constant 0 : index
      %19 = vector.load %arg7[%c0_14, %c0_15] : memref<16x32xf32, #tpu.memory_space<vmem>>, vector<16x32xf32>
      %cst_16 = arith.constant 5.000000e-01 : f32
      %20 = vector.broadcast %cst_16 : f32 to vector<16x32xf32>
      %21 = arith.mulf %20, %18 : vector<16x32xf32>
      %22 = math.exp %21 : vector<16x32xf32>
      %23 = arith.mulf %19, %22 : vector<16x32xf32>
      %24 = arith.addf %17, %23 : vector<16x32xf32>
      %c0_17 = arith.constant 0 : index
      %c0_18 = arith.constant 0 : index
      %25 = vector.load %arg5[%c0_17, %c0_18] : memref<32x128xf32, #tpu.memory_space<vmem>>, vector<32x128xf32>
      %cst_19 = arith.constant dense<0.000000e+00> : vector<16x128xf32>
      %26 = tpu.matmul %24, %25, %cst_19 {dimension_numbers = #tpu.dot_dimension_numbers<[1], [0], [0], [1], [0, 0, 1, 1], [], []>} : vector<16x32xf32>, vector<32x128xf32>, vector<16x128xf32> -> vector<16x128xf32>
      %c0_20 = arith.constant 0 : index
      %c0_21 = arith.constant 0 : index
      %27 = vector.load %arg6[%c0_20, %c0_21] : memref<1x128xf32, #tpu.memory_space<vmem>>, vector<1x128xf32>
      %28 = vector.broadcast %27 : vector<1x128xf32> to vector<16x128xf32>
      %29 = arith.addf %26, %28 : vector<16x128xf32>
      %c0_22 = arith.constant 0 : index
      %c0_23 = arith.constant 0 : index
      %30 = vector.load %arg8[%c0_22, %c0_23] : memref<16x128xf32, #tpu.memory_space<vmem>>, vector<16x128xf32>
      tpu.vector_store %arg8[%c0_22, %c0_23], %29 {strides = array<i32>} : memref<16x128xf32, #tpu.memory_space<vmem>>, vector<16x128xf32>,
    } else {
    }
    return
  }
  func.func @transform_0(%arg0: i32, %arg1: i32) -> (i32, i32) {
    %c0_i32 = arith.constant 0 : i32
    return %arg0, %arg1 : i32, i32
  }
  func.func @transform_1(%arg0: i32, %arg1: i32) -> (i32, i32) {
    %c0_i32 = arith.constant 0 : i32
    %c0_i32_0 = arith.constant 0 : i32
    return %arg1, %c0_i32 : i32, i32
  }
  func.func @transform_2(%arg0: i32, %arg1: i32) -> (i32, i32) {
    %c0_i32 = arith.constant 0 : i32
    %c0_i32_0 = arith.constant 0 : i32
    %c0_i32_1 = arith.constant 0 : i32
    return %c0_i32, %c0_i32_0 : i32, i32
  }
  func.func @transform_3(%arg0: i32, %arg1: i32) -> (i32, i32) {
    %c0_i32 = arith.constant 0 : i32
    %c0_i32_0 = arith.constant 0 : i32
    %c0_i32_1 = arith.constant 0 : i32
    return %c0_i32, %c0_i32_0 : i32, i32
  }
  func.func @transform_4(%arg0: i32, %arg1: i32) -> (i32, i32) {
    %c0_i32 = arith.constant 0 : i32
    %c0_i32_0 = arith.constant 0 : i32
    %c0_i32_1 = arith.constant 0 : i32
    return %c0_i32, %c0_i32_0 : i32, i32
  }
  func.func @transform_5(%arg0: i32, %arg1: i32) -> (i32, i32) {
    %c0_i32 = arith.constant 0 : i32
    %c0_i32_0 = arith.constant 0 : i32
    return %arg0, %c0_i32 : i32, i32
  }
  func.func @transform_6(%arg0: i32, %arg1: i32) -> (i32, i32) {
    %c0_i32 = arith.constant 0 : i32
    %c0_i32_0 = arith.constant 0 : i32
    return %arg0, %c0_i32 : i32, i32
  }
  func.func @transform_7(%arg0: i32, %arg1: i32) -> (i32, i32) {
    %c0_i32 = arith.constant 0 : i32
    %c0_i32_0 = arith.constant 0 : i32
    return %arg0, %c0_i32 : i32, i32
  }
}

</mosaic_0001>

<bundles_post_ra>
// kernel: vib_forward.1
= control target key start
LH: loop header
LB: loop body
LE: loop exit
PB: predicated region body
PF: predicated region fallthrough
CT: control target
= control target key end

     0   :  { %s1167_s30 = smov 96   ;;  %vm754_vm0 = vcmask 261120   ;;  %s1484_s1 = inlined_call_operand.vmem [shape: bf16[1024,128], index: 1, kind: input, shape index: {}]   ;;  %s1485_s0 = inlined_call_operand.vmem [shape: bf16[16,1024], index: 0, kind: input, shape index: {}]   ;;  %s1486_s2 = inlined_call_operand.vmem [shape: f32[1,128], index: 2, kind: input, shape index: {}]   ;;  %s1487_s3 = inlined_call_operand.vmem [shape: f32[32,128], index: 3, kind: input, shape index: {}]   ;;  %s1488_s7 = inlined_call_operand.vmem [shape: f32[16,128], index: 7, kind: output, shape index: {1}]   ;;  %s1489_s4 = inlined_call_operand.vmem [shape: f32[1,128], index: 4, kind: input, shape index: {}]   ;;  %s1490_s5 = inlined_call_operand.vmem [shape: f32[16,32], index: 5, kind: input, shape index: {}]   ;;  %s1491_s6 = inlined_call_operand.vmem [shape: f32[16,128], index: 6, kind: output, shape index: {0}]  }
   0x1   :  { %v1091_v0 = vld [vmem:[%s1484_s1 + $0x38] sm:$0xff]  ;;  %v1090_v4 = vld [vmem:[%s1484_s1 + $0x30] sm:$0xff]  ;;  %v1089_v8 = vld [vmem:[%s1484_s1 + $0x28] sm:$0xff] }
   0x2   :  { %v1099_v1 = vld [vmem:[%s1484_s1 + $0x78] sm:$0xff]  ;;  %585 = vmatpush.bf16.msra.mxu0 %v1091_v0  ;;  %v1098_v5 = vld [vmem:[%s1484_s1 + $0x70] sm:$0xff]  ;;  %v1097_v9 = vld [vmem:[%s1484_s1 + $0x68] sm:$0xff] }
   0x3   :  { %v1107_v2 = vld [vmem:[%s1484_s1 + $0xb8] sm:$0xff]  ;;  %599 = vmatpush.bf16.msra.mxu1 %v1099_v1  ;;  %v1106_v6 = vld [vmem:[%s1484_s1 + $0xb0] sm:$0xff]  ;;  %v1105_v10 = vld [vmem:[%s1484_s1 + $0xa8] sm:$0xff] }
   0x4   :  { %v1115_v3 = vld [vmem:[%s1484_s1 + $0xf8] sm:$0xff]  ;;  %613 = vmatpush.bf16.msra.mxu2 %v1107_v2  ;;  %v1114_v7 = vld [vmem:[%s1484_s1 + $0xf0] sm:$0xff]  ;;  %v1113_v11 = vld [vmem:[%s1484_s1 + $0xe8] sm:$0xff] }
   0x5   :  { %627 = vmatpush.bf16.msra.mxu3 %v1115_v3  ;;  %v1088_v12 = vld [vmem:[%s1484_s1 + $0x20] sm:$0xff]  ;;  %v1087_v16 = vld [vmem:[%s1484_s1 + $0x18] sm:$0xff]  ;;  %v1086_v20 = vld [vmem:[%s1484_s1 + $0x10] sm:$0xff] }
   0x6   :  { %586 = vmatpush.bf16.msra.mxu0 %v1090_v4  ;;  %v1096_v13 = vld [vmem:[%s1484_s1 + $0x60] sm:$0xff]  ;;  %v1095_v17 = vld [vmem:[%s1484_s1 + $0x58] sm:$0xff]  ;;  %v1094_v21 = vld [vmem:[%s1484_s1 + $0x50] sm:$0xff] }
   0x7   :  { %600 = vmatpush.bf16.msra.mxu1 %v1098_v5  ;;  %v1104_v14 = vld [vmem:[%s1484_s1 + $0xa0] sm:$0xff]  ;;  %v1103_v18 = vld [vmem:[%s1484_s1 + $0x98] sm:$0xff]  ;;  %v1102_v22 = vld [vmem:[%s1484_s1 + $0x90] sm:$0xff] }
   0x8   :  { %614 = vmatpush.bf16.msra.mxu2 %v1106_v6  ;;  %v1112_v15 = vld [vmem:[%s1484_s1 + $0xe0] sm:$0xff]  ;;  %v1111_v19 = vld [vmem:[%s1484_s1 + $0xd8] sm:$0xff]  ;;  %v1110_v23 = vld [vmem:[%s1484_s1 + $0xd0] sm:$0xff] }
   0x9   :  { %628 = vmatpush.bf16.msra.mxu3 %v1114_v7  ;;  %v1085_v24 = vld [vmem:[%s1484_s1 + $0x8] sm:$0xff]  ;;  %v1084_v28 = vld [vmem:[%s1484_s1] sm:$0xff]  ;;  %v1123_v32 = vld [vmem:[%s1484_s1 + $0x138] sm:$0xff] }
   0xa   :  { %587 = vmatpush.bf16.msra.mxu0 %v1089_v8  ;;  %v1093_v25 = vld [vmem:[%s1484_s1 + $0x48] sm:$0xff]  ;;  %v1092_v29 = vld [vmem:[%s1484_s1 + $0x40] sm:$0xff]  ;;  %v1131_v33 = vld [vmem:[%s1484_s1 + $0x178] sm:$0xff] }
   0xb   :  { %601 = vmatpush.bf16.msra.mxu1 %v1097_v9  ;;  %v1101_v26 = vld [vmem:[%s1484_s1 + $0x88] sm:$0xff]  ;;  %v1100_v30 = vld [vmem:[%s1484_s1 + $0x80] sm:$0xff]  ;;  %v1139_v42 = vld [vmem:[%s1484_s1 + $0x1b8] sm:$0xff] }
   0xc   :  { %615 = vmatpush.bf16.msra.mxu2 %v1105_v10  ;;  %v1109_v27 = vld [vmem:[%s1484_s1 + $0xc8] sm:$0xff]  ;;  %v1108_v31 = vld [vmem:[%s1484_s1 + $0xc0] sm:$0xff]  ;;  %v1147_v43 = vld [vmem:[%s1484_s1 + $0x1f8] sm:$0xff] }
   0xd   :  { %629 = vmatpush.bf16.msra.mxu3 %v1113_v11  ;;  %v804_v34 = vld [vmem:[%s1485_s0 + $0x8] sm:$0xf]  ;;  %v1149_v36 = vld [vmem:[%s1485_s0 + $0xc] sm:$0xf]  ;;  %v796_v38 = vld [vmem:[%s1485_s0] sm:$0xf] }
   0xe   :  { %588 = vmatpush.bf16.msra.mxu0 %v1088_v12  ;;  %v1153_v35 = vld [vmem:[%s1485_s0 + $0x24] sm:$0xf0]  ;;  %v806_v37 = vld [vmem:[%s1485_s0 + $0x28] sm:$0xf0]  ;;  %v1152_v39 = vld [vmem:[%s1485_s0 + $0x1c] sm:$0xf0] }
   0xf   :  { %602 = vmatpush.bf16.msra.mxu1 %v1096_v13  ;;  %v1148_v40 = vld [vmem:[%s1485_s0 + $0x4] sm:$0xf]  ;;  %v805_v44 = vor.u32 %v1153_v35, %v804_v34  ;;  %v809_v45 = vor.u32 %v1149_v36, %v806_v37  ;;  %v797_v46 = vor.u32 %v1152_v39, %v796_v38  ;;  %v1122_v48 = vld [vmem:[%s1484_s1 + $0x130] sm:$0xff]  ;;  %v1121_v52 = vld [vmem:[%s1484_s1 + $0x128] sm:$0xff] }
  0x10   :  { %616 = vmatpush.bf16.msra.mxu2 %v1104_v14  ;;  %v798_v41 = vld [vmem:[%s1485_s0 + $0x20] sm:$0xf0]  ;;  %v1130_v49 = vld [vmem:[%s1484_s1 + $0x170] sm:$0xff]  ;;  %v1129_v53 = vld [vmem:[%s1484_s1 + $0x168] sm:$0xff] }
  0x11   :  { %630 = vmatpush.bf16.msra.mxu3 %v1112_v15  ;;  %v801_v47 = vor.u32 %v1148_v40, %v798_v41  ;;  %v1138_v50 = vld [vmem:[%s1484_s1 + $0x1b0] sm:$0xff]  ;;  %v1137_v54 = vld [vmem:[%s1484_s1 + $0x1a8] sm:$0xff]  ;;  %v1120_v56 = vld [vmem:[%s1484_s1 + $0x120] sm:$0xff] }
  0x12   :  { %589 = vmatpush.bf16.msra.mxu0 %v1087_v16  ;;  %v1146_v51 = vld [vmem:[%s1484_s1 + $0x1f0] sm:$0xff]  ;;  %v1145_v55 = vld [vmem:[%s1484_s1 + $0x1e8] sm:$0xff]  ;;  %v1128_v57 = vld [vmem:[%s1484_s1 + $0x160] sm:$0xff] }
  0x13   :  { %603 = vmatpush.bf16.msra.mxu1 %v1095_v17  ;;  %v1136_v58 = vld [vmem:[%s1484_s1 + $0x1a0] sm:$0xff]  ;;  %v1119_v60 = vld [vmem:[%s1484_s1 + $0x118] sm:$0xff]  ;;  %v1118_v0 = vld [vmem:[%s1484_s1 + $0x110] sm:$0xff] }
  0x14   :  { %617 = vmatpush.bf16.msra.mxu2 %v1103_v18  ;;  %v1144_v59 = vld [vmem:[%s1484_s1 + $0x1e0] sm:$0xff]  ;;  %v1127_v61 = vld [vmem:[%s1484_s1 + $0x158] sm:$0xff]  ;;  %v1126_v1 = vld [vmem:[%s1484_s1 + $0x150] sm:$0xff] }
  0x15   :  { %631 = vmatpush.bf16.msra.mxu3 %v1111_v19  ;;  %v1135_v62 = vld [vmem:[%s1484_s1 + $0x198] sm:$0xff]  ;;  %v1134_v2 = vld [vmem:[%s1484_s1 + $0x190] sm:$0xff]  ;;  %v1117_v4 = vld [vmem:[%s1484_s1 + $0x108] sm:$0xff] }
  0x16   :  { %590 = vmatpush.bf16.msra.mxu0 %v1086_v20  ;;  %v1143_v63 = vld [vmem:[%s1484_s1 + $0x1d8] sm:$0xff]  ;;  %v1142_v3 = vld [vmem:[%s1484_s1 + $0x1d0] sm:$0xff]  ;;  %v1125_v5 = vld [vmem:[%s1484_s1 + $0x148] sm:$0xff] }
  0x17   :  { %604 = vmatpush.bf16.msra.mxu1 %v1094_v21  ;;  %v1133_v6 = vld [vmem:[%s1484_s1 + $0x188] sm:$0xff]  ;;  %v1116_v8 = vld [vmem:[%s1484_s1 + $0x100] sm:$0xff]  ;;  %v812_v12 = vld [vmem:[%s1485_s0 + $0x10] sm:$0xf] }
  0x18   :  { %618 = vmatpush.bf16.msra.mxu2 %v1102_v22  ;;  %v1141_v7 = vld [vmem:[%s1484_s1 + $0x1c8] sm:$0xff]  ;;  %v1124_v9 = vld [vmem:[%s1484_s1 + $0x140] sm:$0xff]  ;;  %v1154_v13 = vld [vmem:[%s1485_s0 + $0x2c] sm:$0xf0] }
  0x19   :  { %632 = vmatpush.bf16.msra.mxu3 %v1110_v23  ;;  %v1132_v10 = vld [vmem:[%s1484_s1 + $0x180] sm:$0xff]  ;;  %v1150_v14 = vld [vmem:[%s1485_s0 + $0x14] sm:$0xf]  ;;  %v820_v16 = vld [vmem:[%s1485_s0 + $0x18] sm:$0xf]  ;;  %v813_v20 = vor.u32 %v1154_v13, %v812_v12 }
  0x1a   :  { %591 = vmatpush.bf16.msra.mxu0 %v1085_v24  ;;  %v1140_v11 = vld [vmem:[%s1484_s1 + $0x1c0] sm:$0xff]  ;;  %v814_v15 = vld [vmem:[%s1485_s0 + $0x30] sm:$0xf0]  ;;  %v1155_v17 = vld [vmem:[%s1485_s0 + $0x34] sm:$0xf0] }
  0x1b   :  { %605 = vmatpush.bf16.msra.mxu1 %v1093_v25  ;;  %v1151_v18 = vld [vmem:[%s1485_s0 + $0x1c] sm:$0xf]  ;;  %v817_v21 = vor.u32 %v1150_v14, %v814_v15  ;;  %v821_v22 = vor.u32 %v1155_v17, %v820_v16  ;;  %v748_v38 = vld [vmem:[%s1487_s3 + $0x10] sm:$0xff] }
  0x1c   :  { %619 = vmatpush.bf16.msra.mxu2 %v1101_v26  ;;  %v822_v19 = vld [vmem:[%s1485_s0 + $0x38] sm:$0xf0] }
  0x1d   :  { %633 = vmatpush.bf16.msra.mxu3 %v1109_v27  ;;  %v825_v23 = vor.u32 %v1151_v18, %v822_v19  ;;  %v749_v37 = vld [vmem:[%s1487_s3 + $0x18] sm:$0xff] }
  0x1e   :  { %592 = vmatpush.bf16.msra.mxu0 %v1084_v28 }
  0x1f   :  { %606 = vmatpush.bf16.msra.mxu1 %v1092_v29 }
  0x20   :  { %620 = vmatpush.bf16.msra.mxu2 %v1100_v30 }
  0x21   :  { %634 = vmatpush.bf16.msra.mxu3 %v1108_v31  ;;  %593 = vmatmul.bf16.vlgmr.msra.gmra.mxu0 %v797_v46 }
  0x22   :  { %641 = vmatpush.bf16.msrb.mxu0 %v1123_v32  ;;  %607 = vmatmul.bf16.vlgmr.msra.gmra.mxu1 %v801_v47  ;;  %v1161_v47 = vld [vmem:[%s1486_s2] ss:$0 sm:$0xff] }
  0x23   :  { %655 = vmatpush.bf16.msrb.mxu1 %v1131_v33  ;;  %621 = vmatmul.bf16.vlgmr.msra.gmra.mxu2 %v805_v44 }
  0x24   :  { %669 = vmatpush.bf16.msrb.mxu2 %v1139_v42  ;;  %635 = vmatmul.bf16.vlgmr.msra.gmra.mxu3 %v809_v45 }
  0x25   :  { %683 = vmatpush.bf16.msrb.mxu3 %v1147_v43 }
  0x26   :  { %642 = vmatpush.bf16.msrb.mxu0 %v1122_v48 }
  0x27   :  { %656 = vmatpush.bf16.msrb.mxu1 %v1130_v49 }
  0x28   :  { %670 = vmatpush.bf16.msrb.mxu2 %v1138_v50 }
  0x29   :  { %684 = vmatpush.bf16.msrb.mxu3 %v1146_v51 }
  0x2a   :  { %643 = vmatpush.bf16.msrb.mxu0 %v1121_v52 }
  0x2b   :  { %657 = vmatpush.bf16.msrb.mxu1 %v1129_v53 }
  0x2c   :  { %671 = vmatpush.bf16.msrb.mxu2 %v1137_v54 }
  0x2d   :  { %685 = vmatpush.bf16.msrb.mxu3 %v1145_v55 }
  0x2e   :  { %644 = vmatpush.bf16.msrb.mxu0 %v1120_v56 }
  0x2f   :  { %658 = vmatpush.bf16.msrb.mxu1 %v1128_v57 }
  0x30   :  { %672 = vmatpush.bf16.msrb.mxu2 %v1136_v58 }
  0x31   :  { %686 = vmatpush.bf16.msrb.mxu3 %v1144_v59 }
  0x32   :  { %645 = vmatpush.bf16.msrb.mxu0 %v1119_v60 }
  0x33   :  { %659 = vmatpush.bf16.msrb.mxu1 %v1127_v61 }
  0x34   :  { %673 = vmatpush.bf16.msrb.mxu2 %v1135_v62 }
  0x35   :  { %687 = vmatpush.bf16.msrb.mxu3 %v1143_v63 }
  0x36   :  { %646 = vmatpush.bf16.msrb.mxu0 %v1118_v0 }
  0x37   :  { %660 = vmatpush.bf16.msrb.mxu1 %v1126_v1  ;;  %v747_v1 = vld [vmem:[%s1487_s3 + $0x8] sm:$0xff] }
  0x38   :  { %674 = vmatpush.bf16.msrb.mxu2 %v1134_v2  ;;  %v746_v2 = vld [vmem:[%s1487_s3] sm:$0xff] }
  0x39   :  { %688 = vmatpush.bf16.msrb.mxu3 %v1142_v3  ;;  %v726_v3 = vld [vmem:[%s1490_s5] sm:$0xff] }
  0x3a   :  { %647 = vmatpush.bf16.msrb.mxu0 %v1117_v4 }
  0x3b   :  { %661 = vmatpush.bf16.msrb.mxu1 %v1125_v5 }
  0x3c   :  { %675 = vmatpush.bf16.msrb.mxu2 %v1133_v6 }
  0x3d   :  { %689 = vmatpush.bf16.msrb.mxu3 %v1141_v7  ;;  %v727_v7 = vld [vmem:[%s1490_s5 + $0x8] sm:$0xff] }
  0x3e   :  { %648 = vmatpush.bf16.msrb.mxu0 %v1116_v8 }
  0x3f   :  { %662 = vmatpush.bf16.msrb.mxu1 %v1124_v9 }
  0x40   :  { %676 = vmatpush.bf16.msrb.mxu2 %v1132_v10 }
  0x41   :  { %690 = vmatpush.bf16.msrb.mxu3 %v1140_v11  ;;  %649 = vmatmul.bf16.vlgmr.msrb.gmra.mxu0 %v813_v20  ;;  %v1162_v11 = vld [vmem:[%s1489_s4] ss:$0 sm:$0xff] }
  0x42   :  { %663 = vmatmul.bf16.vlgmr.msrb.gmra.mxu1 %v817_v21  ;;  %773 = vmatpush.msra.mxu0 %v749_v37 }
  0x43   :  { %677 = vmatmul.bf16.vlgmr.msrb.gmra.mxu2 %v821_v22  ;;  %1156 = vmatpush.msra.mxu1 %v749_v37 }
  0x44   :  { %691 = vmatmul.bf16.vlgmr.msrb.gmra.mxu3 %v825_v23  ;;  %774 = vmatpush.msra.mxu0 %v748_v38 }
  0x45   :  { %1157 = vmatpush.msra.mxu1 %v748_v38 }
  0x46   :  { %775 = vmatpush.msra.mxu0 %v747_v1 }
  0x47   :  { %1158 = vmatpush.msra.mxu1 %v747_v1 }
  0x48   :  { %776 = vmatpush.msra.mxu0 %v746_v2 }
  0x49   :  { %1159 = vmatpush.msra.mxu1 %v746_v2 }
  0x9e   :  { %v594_v24 = vpop.f32.mrf.mxu0 }
  0x9f   :  { %v608_v25 = vpop.f32.mrf.mxu1 }
  0xa0   :  { %v609_v28 = vadd.f32 %v608_v25, %v594_v24 }
  0xa6   :  { %v622_v26 = vpop.f32.mrf.mxu2  ;;  %v596_v29 = vpop.f32.mrf.mxu0 }
  0xa7   :  { %v636_v27 = vpop.f32.mrf.mxu3  ;;  %v610_v30 = vpop.f32.mrf.mxu1  ;;  %v623_v31 = vadd.f32 %v622_v26, %v609_v28 }
  0xa8   :  { %v611_v35 = vadd.f32 %v610_v30, %v596_v29 }
  0xa9   :  { %v637_v34 = vadd.f32 %v636_v27, %v623_v31 }
  0xae   :  { %v624_v32 = vpop.f32.mrf.mxu2 }
  0xaf   :  { %v638_v33 = vpop.f32.mrf.mxu3  ;;  %v625_v41 = vadd.f32 %v624_v32, %v611_v35 }
  0xb1   :  { %v639_v45 = vadd.f32 %v638_v33, %v625_v41 }
  0xbe   :  { %v650_v36 = vpop.f32.mrf.mxu0 }
  0xbf   :  { %v651_v39 = vadd.f32 %v650_v36, %v637_v34  ;;  %v664_v40 = vpop.f32.mrf.mxu1 }
  0xc1   :  { %v665_v42 = vadd.f32 %v664_v40, %v651_v39 }
  0xc6   :  { %v678_v43 = vpop.f32.mrf.mxu2  ;;  %v652_v48 = vpop.f32.mrf.mxu0 }
  0xc7   :  { %v692_v44 = vpop.f32.mrf.mxu3  ;;  %v679_v46 = vadd.f32 %v678_v43, %v665_v42  ;;  %v653_v50 = vadd.f32 %v652_v48, %v639_v45  ;;  %v666_v52 = vpop.f32.mrf.mxu1 }
  0xc9   :  { %v693_v49 = vadd.f32 %v692_v44, %v679_v46  ;;  %v667_v53 = vadd.f32 %v666_v52, %v653_v50 }
  0xcb   :  { %v722_v51 = vadd.f32 %v1161_v47, %v693_v49 }
  0xcd   :  { %724 = vst [vmem:[%s1488_s7] sm:$0xff] %v722_v51  ;;  %v728_v54 = vmul.f32 0.5, %v722_v51 }
  0xce   :  { %v680_v55 = vpop.f32.mrf.mxu2 }
  0xcf   :  { %v681_v56 = vadd.f32 %v680_v55, %v667_v53  ;;  %v730_v57 = vmul.f32 1.442695, %v728_v54  ;;  %v694_v58 = vpop.f32.mrf.mxu3 }
  0xd1   :  { %v695_v59 = vadd.f32 %v694_v58, %v681_v56  ;;  %1163 = vpow2.f32 %v730_v57 }
  0xd3   :  { %v723_v60 = vadd.f32 %v1161_v47, %v695_v59 }
  0xd5   :  { %725 = vst [vmem:[%s1488_s7 + $0x8] sm:$0xff] %v723_v60  ;;  %v729_v61 = vmul.f32 0.5, %v723_v60 }
  0xd7   :  { %v1164_v62 = vpop.eup %1163  ;;  %v732_v63 = vmul.f32 1.442695, %v729_v61 }
  0xd8   :  { %736 = vrot.lane.b32.xlu0 %v1164_v62, %s1167_s30 }
  0xd9   :  { %1165 = vpow2.f32 %v732_v63 }
  0xdf   :  { %v1166_v0 = vpop.eup %1165 }
  0xe0   :  { %738 = vrot.lane.b32.xlu0 %v1166_v0, %s1167_s30 }
 0x14a   :  { %v737_v4 = vpop.permute.xlu0 %736 }
 0x14b   :  { %v742_v5 = vmul.f32 %v737_v4, %v726_v3 }
 0x14d   :  { %v744_v6 = vadd.f32 %v742_v5, %v722_v51 }
 0x14f   :  { %1082 = vmatmul.msk.f32.vlgmr.msra.gmra.mxu0 %vm754_vm0, %v744_v6 }
 0x152   :  { %v739_v8 = vpop.permute.xlu0 %738 }
 0x153   :  { %v743_v9 = vmul.f32 %v739_v8, %v727_v7 }
 0x155   :  { %v745_v10 = vadd.f32 %v743_v9, %v723_v60 }
 0x157   :  { %1083 = vmatmul.msk.f32.vlgmr.msra.gmra.mxu1 %vm754_vm0, %v745_v10 }
 0x1cc   :  { %v778_v12 = vpop.f32.mrf.mxu0 }
 0x1cd   :  { %v779_v13 = vadd.f32 %v1162_v11, %v778_v12 }
 0x1cf   :  { %784 = vst [vmem:[%s1491_s6] sm:$0xff] %v779_v13 }
 0x1d4   :  { %v781_v14 = vpop.f32.mrf.mxu1 }
 0x1d5   :  { %v782_v15 = vadd.f32 %v1162_v11, %v781_v14 }
 0x1d7   :  { %785 = vst [vmem:[%s1491_s6 + $0x8] sm:$0xff] %v782_v15 }

</bundles_post_ra>
